<compile_context>
chip_gen: v5e
topology: v5e:2x2
jax: 0.10.0
libtpu: 0.0.40
codegen_flags: <defaults>
</compile_context>

<pallas_src>
import jax
import jax.numpy as jnp
from jax.experimental import pallas as pl
from jax.experimental.pallas import tpu as pltpu


HIDDEN = 128   # fixed by the module: Linear(obs,128) -> Linear(128,128) -> Linear(128,actions)
N_PAD = 128    # lane-dense padded output width (num_actions zero-padded to 128 lanes)


def dqn_kernel(x_ref, w1_ref, b1_ref, w2_ref, b2_ref, w3_ref, b3_ref, o_ref):
    # Layer 1: Linear(obs_dim -> 128) + ReLU   (MXU matmul, f32 accumulate)
    h1 = jnp.dot(x_ref[...], w1_ref[...], preferred_element_type=jnp.float32)
    h1 = jnp.maximum(h1 + b1_ref[...], 0.0)
    # Layer 2: Linear(128 -> 128) + ReLU  (cast activation to weight dtype so the
    # bf16 path keeps the MXU in bf16; no-op in the f32 path)
    h2 = jnp.dot(h1.astype(w2_ref.dtype), w2_ref[...],
                 preferred_element_type=jnp.float32)
    h2 = jnp.maximum(h2 + b2_ref[...], 0.0)
    # Layer 3: Linear(128 -> 128 padded) — lane-dense output, no activation
    q = jnp.dot(h2.astype(w3_ref.dtype), w3_ref[...],
                preferred_element_type=jnp.float32)
    o_ref[...] = (q + b3_ref[...]).astype(o_ref.dtype)


def _round_up(n, m):
    return ((n + m - 1) // m) * m


def _pick_tb(batch):
    """Batch row-tile selection.

    Small batches: a single MXU-shaped tile (overhead-dominated anyway).
    Large batches: 384..1024-row tiles to amortize per-step overhead, kept to
    >=2 tiles so v7x's two TensorCores can split the 'parallel' batch axis.
    """
    b8 = _round_up(max(batch, 8), 8)
    if b8 <= 512:
        return min(512, _round_up(b8, 128))
    return min(1024, _round_up(pl.cdiv(b8, 2), 128))


def prepare_params(params, num_actions, *, param_dtype=jnp.float32):
    """One-time parameter preparation (call once at init, not per forward).

    Lane-pads the final layer from num_actions to 128 output lanes (zero
    columns are inert) and optionally casts weights to bf16 (v6e/v7x MXU
    lever; biases stay f32 since they are added to the f32 accumulator).
    """
    w1, b1, w2, b2, w3, b3 = params
    hidden = w1.shape[1]
    w3p = jnp.zeros((hidden, N_PAD), w3.dtype).at[:, :num_actions].set(w3)
    b3p = jnp.zeros((1, N_PAD), b3.dtype).at[:, :num_actions].set(b3)
    return (w1.astype(param_dtype), b1.astype(jnp.float32),
            w2.astype(param_dtype), b2.astype(jnp.float32),
            w3p.astype(param_dtype), b3p.astype(jnp.float32))


def dqn_forward(x, prepared_params, num_actions, *, tb=None, slice_output=True):
    """Fused DQN forward.

    x: (B, obs_dim) f32.  prepared_params: output of prepare_params().
    Returns (B, num_actions) f32 if slice_output, else the raw padded
    (b_pad, 128) kernel output (lets the consumer fuse the action slice, e.g.
    into an argmax, instead of paying an extra HBM pass).
    """
    w1, b1, w2, b2, w3p, b3p = prepared_params
    B, obs_dim = x.shape
    hidden = w1.shape[1]

    if tb is None:
        tb = _pick_tb(B)
    b_pad = _round_up(B, tb)

    # Only materialize a padded copy when the batch is not tile-aligned; the
    # tile-aligned case streams x straight from its original HBM buffer.
    xk = x if b_pad == B else jnp.pad(x, ((0, b_pad - B), (0, 0)))
    xk = xk.astype(w1.dtype)   # bf16 path casts activations too; f32 path is a no-op

    grid = (b_pad // tb,)
    out = pl.pallas_call(
        dqn_kernel,
        out_shape=jax.ShapeDtypeStruct((b_pad, N_PAD), jnp.float32),
        grid=grid,
        in_specs=[
            # activations: tiled over the batch grid axis
            pl.BlockSpec((tb, obs_dim), lambda i: (i, 0)),
            # weights/biases: same block every step -> stay VMEM-resident
            pl.BlockSpec((obs_dim, hidden), lambda i: (0, 0)),
            pl.BlockSpec((1, hidden), lambda i: (0, 0)),
            pl.BlockSpec((hidden, hidden), lambda i: (0, 0)),
            pl.BlockSpec((1, hidden), lambda i: (0, 0)),
            pl.BlockSpec((hidden, N_PAD), lambda i: (0, 0)),
            pl.BlockSpec((1, N_PAD), lambda i: (0, 0)),
        ],
        out_specs=pl.BlockSpec((tb, N_PAD), lambda i: (i, 0)),
        compiler_params=pltpu.CompilerParams(
            dimension_semantics=("parallel",),  # batch tiles split across TCs on v7x
        ),
    )(xk, w1, b1, w2, b2, w3p, b3p)

    if not slice_output:
        return out
    return out[:B, :num_actions]


def init_linear(key, fan_in, fan_out):
    """Deterministic PyTorch-style nn.Linear init: U(-1/sqrt(fan_in), 1/sqrt(fan_in))."""
    kw, kb = jax.random.split(key)
    bound = 1.0 / (fan_in ** 0.5)
    w = jax.random.uniform(kw, (fan_in, fan_out), jnp.float32, -bound, bound)
    b = jax.random.uniform(kb, (1, fan_out), jnp.float32, -bound, bound)
    return w, b


def _ref_forward(x, raw_params):
    w1, b1, w2, b2, w3, b3 = raw_params
    h1 = jnp.maximum(x @ w1 + b1, 0.0)
    h2 = jnp.maximum(h1 @ w2 + b2, 0.0)
    return h2 @ w3 + b3


if __name__ == "__main__":
    # Module-consistent shapes: obs_dim=8 (env.observation_space.shape[0]),
    # hidden=128 (fixed by the module), num_actions=6 (env.action_space.n).
    OBS_DIM, NUM_ACTIONS = 8, 6

    key = jax.random.PRNGKey(0)
    kx, kx_big, k1, k2, k3 = jax.random.split(key, 5)

    w1, b1 = init_linear(k1, OBS_DIM, HIDDEN)
    w2, b2 = init_linear(k2, HIDDEN, HIDDEN)
    w3, b3 = init_linear(k3, HIDDEN, NUM_ACTIONS)
    raw_params = (w1, b1, w2, b2, w3, b3)

    # One-time parameter prep (lane padding hoisted out of the forward call).
    params_f32 = prepare_params(raw_params, NUM_ACTIONS)
    params_bf16 = prepare_params(raw_params, NUM_ACTIONS, param_dtype=jnp.bfloat16)

    # Small case (batch=2): single padded 128-row tile, grid=1.
    x_small = jax.random.normal(kx, (2, OBS_DIM), jnp.float32)
    q_small = dqn_forward(x_small, params_f32, NUM_ACTIONS)
    jax.block_until_ready(q_small)
    assert q_small.shape == (2, NUM_ACTIONS)
    assert jnp.allclose(q_small, _ref_forward(x_small, raw_params), atol=1e-5, rtol=1e-5)

    # Replay-buffer-style batch, tile-aligned: no padding copy of x, single tile.
    x_big = jax.random.normal(kx_big, (256, OBS_DIM), jnp.float32)
    q_big = dqn_forward(x_big, params_f32, NUM_ACTIONS)
    jax.block_until_ready(q_big)
    assert q_big.shape == (256, NUM_ACTIONS)
    assert jnp.allclose(q_big, _ref_forward(x_big, raw_params), atol=1e-5, rtol=1e-5)

    # bf16-weight path (v6e/v7x MXU / weight-DMA lever); f32 path above keeps
    # exact parity, so this one only checks loose agreement.
    q_bf16 = dqn_forward(x_big, params_bf16, NUM_ACTIONS)
    jax.block_until_ready(q_bf16)
    assert q_bf16.shape == (256, NUM_ACTIONS)
    assert jnp.allclose(q_bf16, _ref_forward(x_big, raw_params), atol=1e-1, rtol=5e-2)

    print("KERNEL_OK")
</pallas_src>

<mosaic_0001>
module attributes {stable_mosaic.version = 11 : i64} {
  func.func @dqn_kernel(%arg0: i32, %arg1: memref<128x8xf32, #tpu.memory_space<vmem>>, %arg2: memref<8x128xf32, #tpu.memory_space<vmem>>, %arg3: memref<1x128xf32, #tpu.memory_space<vmem>>, %arg4: memref<128x128xf32, #tpu.memory_space<vmem>>, %arg5: memref<1x128xf32, #tpu.memory_space<vmem>>, %arg6: memref<128x128xf32, #tpu.memory_space<vmem>>, %arg7: memref<1x128xf32, #tpu.memory_space<vmem>>, %arg8: memref<128x128xf32, #tpu.memory_space<vmem>>) attributes {dimension_semantics = [#tpu.dimension_semantics<parallel>], iteration_bounds = array<i64: 1>, scalar_prefetch = 0 : i64, scratch_operands = 0 : i64, tpu.core_type = #tpu.core_type<tc>, window_params = [{transform_indices = @transform_0, window_bounds = array<i64: 128, 8>}, {pipeline_mode = #tpu.pipeline_mode<synchronous>, transform_indices = @transform_1, window_bounds = array<i64: 8, 128>}, {pipeline_mode = #tpu.pipeline_mode<synchronous>, transform_indices = @transform_2, window_bounds = array<i64: 1, 128>}, {pipeline_mode = #tpu.pipeline_mode<synchronous>, transform_indices = @transform_3, window_bounds = array<i64: 128, 128>}, {pipeline_mode = #tpu.pipeline_mode<synchronous>, transform_indices = @transform_4, window_bounds = array<i64: 1, 128>}, {pipeline_mode = #tpu.pipeline_mode<synchronous>, transform_indices = @transform_5, window_bounds = array<i64: 128, 128>}, {pipeline_mode = #tpu.pipeline_mode<synchronous>, transform_indices = @transform_6, window_bounds = array<i64: 1, 128>}, {transform_indices = @transform_7, window_bounds = array<i64: 128, 128>}]} {
    %c0 = arith.constant 0 : index
    %c0_0 = arith.constant 0 : index
    %0 = vector.load %arg1[%c0, %c0_0] : memref<128x8xf32, #tpu.memory_space<vmem>>, vector<128x8xf32>
    %c0_1 = arith.constant 0 : index
    %c0_2 = arith.constant 0 : index
    %1 = vector.load %arg2[%c0_1, %c0_2] : memref<8x128xf32, #tpu.memory_space<vmem>>, vector<8x128xf32>
    %cst = arith.constant dense<0.000000e+00> : vector<128x128xf32>
    %2 = tpu.matmul %0, %1, %cst {dimension_numbers = #tpu.dot_dimension_numbers<[1], [0], [0], [1], [0, 0, 1, 1], [], []>} : vector<128x8xf32>, vector<8x128xf32>, vector<128x128xf32> -> vector<128x128xf32>
    %c0_3 = arith.constant 0 : index
    %c0_4 = arith.constant 0 : index
    %3 = vector.load %arg3[%c0_3, %c0_4] : memref<1x128xf32, #tpu.memory_space<vmem>>, vector<1x128xf32>
    %4 = vector.broadcast %3 : vector<1x128xf32> to vector<128x128xf32>
    %5 = arith.addf %2, %4 : vector<128x128xf32>
    %cst_5 = arith.constant 0.000000e+00 : f32
    %6 = vector.broadcast %cst_5 : f32 to vector<128x128xf32>
    %7 = arith.maximumf %5, %6 : vector<128x128xf32>
    %c0_6 = arith.constant 0 : index
    %c0_7 = arith.constant 0 : index
    %8 = vector.load %arg4[%c0_6, %c0_7] : memref<128x128xf32, #tpu.memory_space<vmem>>, vector<128x128xf32>
    %cst_8 = arith.constant dense<0.000000e+00> : vector<128x128xf32>
    %9 = tpu.matmul %7, %8, %cst_8 {dimension_numbers = #tpu.dot_dimension_numbers<[1], [0], [0], [1], [0, 0, 1, 1], [], []>} : vector<128x128xf32>, vector<128x128xf32>, vector<128x128xf32> -> vector<128x128xf32>
    %c0_9 = arith.constant 0 : index
    %c0_10 = arith.constant 0 : index
    %10 = vector.load %arg5[%c0_9, %c0_10] : memref<1x128xf32, #tpu.memory_space<vmem>>, vector<1x128xf32>
    %11 = vector.broadcast %10 : vector<1x128xf32> to vector<128x128xf32>
    %12 = arith.addf %9, %11 : vector<128x128xf32>
    %cst_11 = arith.constant 0.000000e+00 : f32
    %13 = vector.broadcast %cst_11 : f32 to vector<128x128xf32>
    %14 = arith.maximumf %12, %13 : vector<128x128xf32>
    %c0_12 = arith.constant 0 : index
    %c0_13 = arith.constant 0 : index
    %15 = vector.load %arg6[%c0_12, %c0_13] : memref<128x128xf32, #tpu.memory_space<vmem>>, vector<128x128xf32>
    %cst_14 = arith.constant dense<0.000000e+00> : vector<128x128xf32>
    %16 = tpu.matmul %14, %15, %cst_14 {dimension_numbers = #tpu.dot_dimension_numbers<[1], [0], [0], [1], [0, 0, 1, 1], [], []>} : vector<128x128xf32>, vector<128x128xf32>, vector<128x128xf32> -> vector<128x128xf32>
    %c0_15 = arith.constant 0 : index
    %c0_16 = arith.constant 0 : index
    %17 = vector.load %arg7[%c0_15, %c0_16] : memref<1x128xf32, #tpu.memory_space<vmem>>, vector<1x128xf32>
    %18 = vector.broadcast %17 : vector<1x128xf32> to vector<128x128xf32>
    %19 = arith.addf %16, %18 : vector<128x128xf32>
    %c0_17 = arith.constant 0 : index
    %c0_18 = arith.constant 0 : index
    %20 = vector.load %arg8[%c0_17, %c0_18] : memref<128x128xf32, #tpu.memory_space<vmem>>, vector<128x128xf32>
    tpu.vector_store %arg8[%c0_17, %c0_18], %19 {strides = array<i32>} : memref<128x128xf32, #tpu.memory_space<vmem>>, vector<128x128xf32>,
    return
  }
  func.func @transform_0(%arg0: i32) -> (i32, i32) {
    %c0_i32 = arith.constant 0 : i32
    %c0_i32_0 = arith.constant 0 : i32
    return %arg0, %c0_i32 : i32, i32
  }
  func.func @transform_1(%arg0: i32) -> (i32, i32) {
    %c0_i32 = arith.constant 0 : i32
    %c0_i32_0 = arith.constant 0 : i32
    %c0_i32_1 = arith.constant 0 : i32
    return %c0_i32, %c0_i32_0 : i32, i32
  }
  func.func @transform_2(%arg0: i32) -> (i32, i32) {
    %c0_i32 = arith.constant 0 : i32
    %c0_i32_0 = arith.constant 0 : i32
    %c0_i32_1 = arith.constant 0 : i32
    return %c0_i32, %c0_i32_0 : i32, i32
  }
  func.func @transform_3(%arg0: i32) -> (i32, i32) {
    %c0_i32 = arith.constant 0 : i32
    %c0_i32_0 = arith.constant 0 : i32
    %c0_i32_1 = arith.constant 0 : i32
    return %c0_i32, %c0_i32_0 : i32, i32
  }
  func.func @transform_4(%arg0: i32) -> (i32, i32) {
    %c0_i32 = arith.constant 0 : i32
    %c0_i32_0 = arith.constant 0 : i32
    %c0_i32_1 = arith.constant 0 : i32
    return %c0_i32, %c0_i32_0 : i32, i32
  }
  func.func @transform_5(%arg0: i32) -> (i32, i32) {
    %c0_i32 = arith.constant 0 : i32
    %c0_i32_0 = arith.constant 0 : i32
    %c0_i32_1 = arith.constant 0 : i32
    return %c0_i32, %c0_i32_0 : i32, i32
  }
  func.func @transform_6(%arg0: i32) -> (i32, i32) {
    %c0_i32 = arith.constant 0 : i32
    %c0_i32_0 = arith.constant 0 : i32
    %c0_i32_1 = arith.constant 0 : i32
    return %c0_i32, %c0_i32_0 : i32, i32
  }
  func.func @transform_7(%arg0: i32) -> (i32, i32) {
    %c0_i32 = arith.constant 0 : i32
    %c0_i32_0 = arith.constant 0 : i32
    return %arg0, %c0_i32 : i32, i32
  }
}

</mosaic_0001>

<bundles_post_ra>
// kernel: tpu_custom_call.1
= control target key start
LH: loop header
LB: loop body
LE: loop exit
PB: predicated region body
PF: predicated region fallthrough
CT: control target
= control target key end

     0   :  { %12 = vsyncpa [#allocation3], 0  ;;  %s720_s0 = inlined_call_operand.vmem [shape: f32[128,8], index: 0, kind: input, shape index: {}]   ;;  %s721_s1 = inlined_call_operand.vmem [shape: f32[8,128], index: 1, kind: input, shape index: {}]   ;;  %s722_s2 = inlined_call_operand.vmem [shape: f32[1,128], index: 2, kind: input, shape index: {}]   ;;  %s723_s3 = inlined_call_operand.vmem [shape: f32[128,128], index: 3, kind: input, shape index: {}]   ;;  %s724_s4 = inlined_call_operand.vmem [shape: f32[1,128], index: 4, kind: input, shape index: {}]   ;;  %s725_s5 = inlined_call_operand.hbm [shape: f32[128,128], index: 5, kind: input, shape index: {}]   ;;  %s726_s6 = inlined_call_operand.vmem [shape: f32[1,128], index: 6, kind: input, shape index: {}]   ;;  %s727_s7 = inlined_call_operand.hbm [shape: f32[128,128], index: 7, kind: output, shape index: {}]  }
   0x1   :  { %13 = vsyncpa [#allocation4], 0  ;;  %s28_s26 = sshll.u32 %s725_s5, 4  ;;  %s522_s27 = smov [#allocation2]   ;;  %s29_s26 = int_to_ptr.hbm [resolvable:$true] %s28_s26 }
   0x2   :  { %s30_s28 = sshll.u32 %s522_s27, 4  ;;  %s523_s29 = smov 128   ;;  %s31_s28 = int_to_ptr.vmem [resolvable:$true] %s30_s28 }
   0x3   :  { %s524_s30 = smov 8  }
   0x4   :  { %36 = dma.hbm_to_vmem [thread:$0]  %s29_s26, 2048, %s31_s28, [#allocation3], %s523_s29, %s523_s29, %s524_s30  }
   0x5   :  { %518 = dma.done.wait [#allocation3], 2048  }
   0x6   :  { %519 = vsyncadd [#allocation3], 4294965248  ;;  %vm64_vm0 = vcmask 64512   ;;  %v59_v0 = vld [vmem:[%s721_s1] sm:$0xff]  ;;  %v44_v2 = vld [vmem:[%s720_s0 + $0x8] sm:$0xff]  ;;  %s402_s10 = sshll.u32 %s727_s7, 4  ;;  %s403_s10 = int_to_ptr.hbm [resolvable:$true] %s402_s10 }
   0x7   :  { %v43_v1 = vld [vmem:[%s720_s0] sm:$0xff]  ;;  %128 = vmatpush.msra.mxu0 %v59_v0  ;;  %v45_v3 = vld [vmem:[%s720_s0 + $0x10] sm:$0xff]  ;;  %v46_v4 = vld [vmem:[%s720_s0 + $0x18] sm:$0xff] }
   0x8   :  { %415 = vmatmul.msk.f32.vlgmr.msra.gmra.mxu0 %vm64_vm0, %v43_v1  ;;  %v47_v5 = vld [vmem:[%s720_s0 + $0x20] sm:$0xff]  ;;  %v48_v6 = vld [vmem:[%s720_s0 + $0x28] sm:$0xff]  ;;  %v49_v7 = vld [vmem:[%s720_s0 + $0x30] sm:$0xff] }
   0x9   :  { %v50_v8 = vld [vmem:[%s720_s0 + $0x38] sm:$0xff]  ;;  %v51_v9 = vld [vmem:[%s720_s0 + $0x40] sm:$0xff]  ;;  %v208_v11 = vld [vmem:[%s723_s3 + $0x70] sm:$0xff] }
   0xa   :  { %v209_v10 = vld [vmem:[%s723_s3 + $0x78] sm:$0xff]  ;;  %v207_v12 = vld [vmem:[%s723_s3 + $0x68] sm:$0xff]  ;;  %v206_v14 = vld [vmem:[%s723_s3 + $0x60] sm:$0xff] }
   0xb   :  { %214 = vmatpush.msra.mxu1 %v209_v10  ;;  %431 = vmatpush.msra.mxu3 %v209_v10  ;;  %v52_v13 = vld [vmem:[%s720_s0 + $0x48] sm:$0xff]  ;;  %v205_v15 = vld [vmem:[%s723_s3 + $0x58] sm:$0xff]  ;;  %v204_v16 = vld [vmem:[%s723_s3 + $0x50] sm:$0xff] }
   0xc   :  { %v203_v17 = vld [vmem:[%s723_s3 + $0x48] sm:$0xff]  ;;  %v53_v18 = vld [vmem:[%s720_s0 + $0x50] sm:$0xff]  ;;  %v202_v19 = vld [vmem:[%s723_s3 + $0x40] sm:$0xff] }
   0xd   :  { %215 = vmatpush.msra.mxu1 %v208_v11  ;;  %432 = vmatpush.msra.mxu3 %v208_v11  ;;  %v201_v20 = vld [vmem:[%s723_s3 + $0x38] sm:$0xff]  ;;  %v200_v21 = vld [vmem:[%s723_s3 + $0x30] sm:$0xff]  ;;  %v199_v22 = vld [vmem:[%s723_s3 + $0x28] sm:$0xff] }
   0xe   :  { %v54_v23 = vld [vmem:[%s720_s0 + $0x58] sm:$0xff]  ;;  %v198_v24 = vld [vmem:[%s723_s3 + $0x20] sm:$0xff]  ;;  %v196_v26 = vld [vmem:[%s723_s3 + $0x10] sm:$0xff] }
   0xf   :  { %216 = vmatpush.msra.mxu1 %v207_v12  ;;  %433 = vmatpush.msra.mxu3 %v207_v12  ;;  %v197_v25 = vld [vmem:[%s723_s3 + $0x18] sm:$0xff]  ;;  %v55_v27 = vld [vmem:[%s720_s0 + $0x60] sm:$0xff]  ;;  %v195_v28 = vld [vmem:[%s723_s3 + $0x8] sm:$0xff] }
  0x10   :  { %416 = vmatmul.msk.f32.gmra.mxu0 %vm64_vm0, %v44_v2  ;;  %v194_v29 = vld [vmem:[%s723_s3] sm:$0xff]  ;;  %v56_v30 = vld [vmem:[%s720_s0 + $0x68] sm:$0xff]  ;;  %v57_v31 = vld [vmem:[%s720_s0 + $0x70] sm:$0xff] }
  0x11   :  { %217 = vmatpush.msra.mxu1 %v206_v14  ;;  %434 = vmatpush.msra.mxu3 %v206_v14  ;;  %v58_v32 = vld [vmem:[%s720_s0 + $0x78] sm:$0xff]  ;;  %v690_v33 = vld [vmem:[%s722_s2] ss:$0 sm:$0xff]  ;;  %v309_v0 = vld [vmem:[#allocation2 + $0x70] sm:$0xff] }
  0x12   :  { %v310_v61 = vld [vmem:[#allocation2 + $0x78] sm:$0xff]  ;;  %v308_v2 = vld [vmem:[#allocation2 + $0x68] sm:$0xff]  ;;  %v303_v10 = vld [vmem:[#allocation2 + $0x40] sm:$0xff] }
  0x13   :  { %218 = vmatpush.msra.mxu1 %v205_v15  ;;  %435 = vmatpush.msra.mxu3 %v205_v15  ;;  %v302_v11 = vld [vmem:[#allocation2 + $0x38] sm:$0xff]  ;;  %v301_v14 = vld [vmem:[#allocation2 + $0x30] sm:$0xff] }
  0x14   :  { %315 = vmatpush.msra.mxu2 %v310_v61 }
  0x15   :  { %219 = vmatpush.msra.mxu1 %v204_v16  ;;  %436 = vmatpush.msra.mxu3 %v204_v16  ;;  %v300_v16 = vld [vmem:[#allocation2 + $0x28] sm:$0xff] }
  0x16   :  { %316 = vmatpush.msra.mxu2 %v309_v0 }
  0x17   :  { %220 = vmatpush.msra.mxu1 %v203_v17  ;;  %437 = vmatpush.msra.mxu3 %v203_v17  ;;  %v299_v17 = vld [vmem:[#allocation2 + $0x20] sm:$0xff] }
  0x18   :  { %417 = vmatmul.msk.f32.gmra.mxu0 %vm64_vm0, %v45_v3  ;;  %317 = vmatpush.msra.mxu2 %v308_v2  ;;  %v307_v3 = vld [vmem:[#allocation2 + $0x60] sm:$0xff] }
  0x19   :  { %221 = vmatpush.msra.mxu1 %v202_v19  ;;  %438 = vmatpush.msra.mxu3 %v202_v19 }
  0x1a   :  { %318 = vmatpush.msra.mxu2 %v307_v3 }
  0x1b   :  { %222 = vmatpush.msra.mxu1 %v201_v20  ;;  %439 = vmatpush.msra.mxu3 %v201_v20 }
  0x1d   :  { %223 = vmatpush.msra.mxu1 %v200_v21  ;;  %440 = vmatpush.msra.mxu3 %v200_v21  ;;  %v297_v21 = vld [vmem:[#allocation2 + $0x10] sm:$0xff] }
  0x1f   :  { %224 = vmatpush.msra.mxu1 %v199_v22  ;;  %441 = vmatpush.msra.mxu3 %v199_v22 }
  0x20   :  { %418 = vmatmul.msk.f32.gmra.mxu0 %vm64_vm0, %v46_v4  ;;  %v306_v4 = vld [vmem:[#allocation2 + $0x58] sm:$0xff] }
  0x21   :  { %225 = vmatpush.msra.mxu1 %v198_v24  ;;  %442 = vmatpush.msra.mxu3 %v198_v24  ;;  %v295_v24 = vld [vmem:[#allocation2] sm:$0xff] }
  0x22   :  { %319 = vmatpush.msra.mxu2 %v306_v4 }
  0x23   :  { %226 = vmatpush.msra.mxu1 %v197_v25  ;;  %443 = vmatpush.msra.mxu3 %v197_v25 }
  0x25   :  { %227 = vmatpush.msra.mxu1 %v196_v26  ;;  %444 = vmatpush.msra.mxu3 %v196_v26 }
  0x27   :  { %228 = vmatpush.msra.mxu1 %v195_v28  ;;  %445 = vmatpush.msra.mxu3 %v195_v28 }
  0x28   :  { %419 = vmatmul.msk.f32.gmra.mxu0 %vm64_vm0, %v47_v5 }
  0x29   :  { %229 = vmatpush.msra.mxu1 %v194_v29  ;;  %446 = vmatpush.msra.mxu3 %v194_v29 }
  0x2b   :  { %447 = vmatpush.msrb.mxu3 %v310_v61 }
  0x2d   :  { %448 = vmatpush.msrb.mxu3 %v309_v0 }
  0x2f   :  { %449 = vmatpush.msrb.mxu3 %v308_v2 }
  0x30   :  { %420 = vmatmul.msk.f32.gmra.mxu0 %vm64_vm0, %v48_v6 }
  0x31   :  { %450 = vmatpush.msrb.mxu3 %v307_v3 }
  0x33   :  { %451 = vmatpush.msrb.mxu3 %v306_v4 }
  0x38   :  { %421 = vmatmul.msk.f32.gmra.mxu0 %vm64_vm0, %v49_v7  ;;  %v305_v7 = vld [vmem:[#allocation2 + $0x50] sm:$0xff] }
  0x39   :  { %320 = vmatpush.msra.mxu2 %v305_v7  ;;  %452 = vmatpush.msrb.mxu3 %v305_v7 }
  0x40   :  { %422 = vmatmul.msk.f32.gmra.mxu0 %vm64_vm0, %v50_v8 }
  0x48   :  { %423 = vmatmul.msk.f32.gmra.mxu0 %vm64_vm0, %v51_v9  ;;  %v304_v9 = vld [vmem:[#allocation2 + $0x48] sm:$0xff] }
  0x49   :  { %321 = vmatpush.msra.mxu2 %v304_v9  ;;  %453 = vmatpush.msrb.mxu3 %v304_v9 }
  0x4b   :  { %322 = vmatpush.msra.mxu2 %v303_v10  ;;  %454 = vmatpush.msrb.mxu3 %v303_v10 }
  0x4d   :  { %323 = vmatpush.msra.mxu2 %v302_v11  ;;  %455 = vmatpush.msrb.mxu3 %v302_v11 }
  0x4f   :  { %324 = vmatpush.msra.mxu2 %v301_v14  ;;  %456 = vmatpush.msrb.mxu3 %v301_v14 }
  0x50   :  { %424 = vmatmul.msk.f32.gmra.mxu0 %vm64_vm0, %v52_v13 }
  0x51   :  { %325 = vmatpush.msra.mxu2 %v300_v16  ;;  %457 = vmatpush.msrb.mxu3 %v300_v16 }
  0x53   :  { %326 = vmatpush.msra.mxu2 %v299_v17  ;;  %458 = vmatpush.msrb.mxu3 %v299_v17 }
  0x58   :  { %425 = vmatmul.msk.f32.gmra.mxu0 %vm64_vm0, %v53_v18  ;;  %v298_v18 = vld [vmem:[#allocation2 + $0x18] sm:$0xff] }
  0x59   :  { %327 = vmatpush.msra.mxu2 %v298_v18  ;;  %459 = vmatpush.msrb.mxu3 %v298_v18 }
  0x5b   :  { %328 = vmatpush.msra.mxu2 %v297_v21  ;;  %460 = vmatpush.msrb.mxu3 %v297_v21 }
  0x60   :  { %426 = vmatmul.msk.f32.gmra.mxu0 %vm64_vm0, %v54_v23  ;;  %v296_v23 = vld [vmem:[#allocation2 + $0x8] sm:$0xff] }
  0x61   :  { %329 = vmatpush.msra.mxu2 %v296_v23  ;;  %461 = vmatpush.msrb.mxu3 %v296_v23 }
  0x63   :  { %330 = vmatpush.msra.mxu2 %v295_v24  ;;  %462 = vmatpush.msrb.mxu3 %v295_v24 }
  0x68   :  { %427 = vmatmul.msk.f32.gmra.mxu0 %vm64_vm0, %v55_v27 }
  0x70   :  { %428 = vmatmul.msk.f32.gmra.mxu0 %vm64_vm0, %v56_v30 }
  0x78   :  { %429 = vmatmul.msk.f32.gmra.mxu0 %vm64_vm0, %v57_v31 }
  0x80   :  { %430 = vmatmul.msk.f32.gmra.mxu0 %vm64_vm0, %v58_v32 }
  0x85   :  { %v130_v34 = vpop.f32.mrf.mxu0 }
  0x86   :  { %v131_v35 = vadd.f32 %v690_v33, %v130_v34 }
  0x88   :  { %v178_v36 = vmax.f32 %v131_v35, 0.0  ;;  %v468_v35 = vld [vmem:[%s724_s4] ss:$0 sm:$0xff] }
  0x8a   :  { %230 = vmatmul.f32.vlgmr.msra.gmra.mxu1 %v178_v36 }
  0x8d   :  { %v133_v37 = vpop.f32.mrf.mxu0 }
  0x8e   :  { %v134_v38 = vadd.f32 %v690_v33, %v133_v37 }
  0x90   :  { %v179_v39 = vmax.f32 %v134_v38, 0.0 }
  0x92   :  { %233 = vmatmul.f32.gmra.mxu1 %v179_v39 }
  0x95   :  { %v136_v40 = vpop.f32.mrf.mxu0 }
  0x96   :  { %v137_v41 = vadd.f32 %v690_v33, %v136_v40 }
  0x98   :  { %v180_v42 = vmax.f32 %v137_v41, 0.0 }
  0x9a   :  { %236 = vmatmul.f32.gmra.mxu1 %v180_v42 }
  0x9d   :  { %v139_v43 = vpop.f32.mrf.mxu0 }
  0x9e   :  { %v140_v44 = vadd.f32 %v690_v33, %v139_v43 }
  0xa0   :  { %v181_v45 = vmax.f32 %v140_v44, 0.0 }
  0xa2   :  { %239 = vmatmul.f32.gmra.mxu1 %v181_v45 }
  0xa5   :  { %v142_v46 = vpop.f32.mrf.mxu0 }
  0xa6   :  { %v143_v47 = vadd.f32 %v690_v33, %v142_v46 }
  0xa8   :  { %v182_v48 = vmax.f32 %v143_v47, 0.0 }
  0xaa   :  { %242 = vmatmul.f32.gmra.mxu1 %v182_v48 }
  0xad   :  { %v145_v49 = vpop.f32.mrf.mxu0 }
  0xae   :  { %v146_v50 = vadd.f32 %v690_v33, %v145_v49 }
  0xb0   :  { %v183_v51 = vmax.f32 %v146_v50, 0.0 }
  0xb2   :  { %245 = vmatmul.f32.gmra.mxu1 %v183_v51 }
  0xb5   :  { %v148_v52 = vpop.f32.mrf.mxu0 }
  0xb6   :  { %v149_v53 = vadd.f32 %v690_v33, %v148_v52 }
  0xb8   :  { %v184_v54 = vmax.f32 %v149_v53, 0.0 }
  0xba   :  { %248 = vmatmul.f32.gmra.mxu1 %v184_v54 }
  0xbd   :  { %v151_v55 = vpop.f32.mrf.mxu0 }
  0xbe   :  { %v152_v56 = vadd.f32 %v690_v33, %v151_v55 }
  0xc0   :  { %v185_v57 = vmax.f32 %v152_v56, 0.0 }
  0xc2   :  { %251 = vmatmul.f32.gmra.mxu1 %v185_v57 }
  0xc5   :  { %v154_v58 = vpop.f32.mrf.mxu0 }
  0xc6   :  { %v155_v59 = vadd.f32 %v690_v33, %v154_v58 }
  0xc8   :  { %v186_v60 = vmax.f32 %v155_v59, 0.0 }
  0xca   :  { %254 = vmatmul.f32.gmra.mxu1 %v186_v60 }
  0xcd   :  { %v157_v62 = vpop.f32.mrf.mxu0 }
  0xce   :  { %v158_v63 = vadd.f32 %v690_v33, %v157_v62 }
  0xd0   :  { %v187_v1 = vmax.f32 %v158_v63, 0.0 }
  0xd2   :  { %257 = vmatmul.f32.gmra.mxu1 %v187_v1 }
  0xd5   :  { %v160_v5 = vpop.f32.mrf.mxu0 }
  0xd6   :  { %v161_v6 = vadd.f32 %v690_v33, %v160_v5 }
  0xd8   :  { %v188_v8 = vmax.f32 %v161_v6, 0.0 }
  0xda   :  { %260 = vmatmul.f32.gmra.mxu1 %v188_v8 }
  0xdd   :  { %v163_v12 = vpop.f32.mrf.mxu0 }
  0xde   :  { %v164_v13 = vadd.f32 %v690_v33, %v163_v12 }
  0xe0   :  { %v189_v15 = vmax.f32 %v164_v13, 0.0 }
  0xe2   :  { %263 = vmatmul.f32.vlgmr.msra.gmra.mxu3 %v189_v15 }
  0xe5   :  { %v166_v19 = vpop.f32.mrf.mxu0 }
  0xe6   :  { %v167_v20 = vadd.f32 %v690_v33, %v166_v19  ;;  %v469_v19 = vld [vmem:[%s726_s6] ss:$0 sm:$0xff]  ;;  %s525_s6 = smov [#allocation5]  }
  0xe7   :  { %s400_s28 = sshll.u32 %s525_s6, 4  ;;  %s401_s28 = int_to_ptr.vmem [resolvable:$true] %s400_s28 }
  0xe8   :  { %v190_v22 = vmax.f32 %v167_v20, 0.0 }
  0xea   :  { %266 = vmatmul.f32.gmra.mxu3 %v190_v22 }
  0xed   :  { %v169_v25 = vpop.f32.mrf.mxu0 }
  0xee   :  { %v170_v26 = vadd.f32 %v690_v33, %v169_v25 }
  0xf0   :  { %v191_v27 = vmax.f32 %v170_v26, 0.0 }
  0xf2   :  { %269 = vmatmul.f32.gmra.mxu3 %v191_v27 }
  0xf5   :  { %v172_v28 = vpop.f32.mrf.mxu0 }
  0xf6   :  { %v173_v29 = vadd.f32 %v690_v33, %v172_v28 }
  0xf8   :  { %v192_v30 = vmax.f32 %v173_v29, 0.0 }
  0xfa   :  { %272 = vmatmul.f32.gmra.mxu3 %v192_v30 }
  0xfd   :  { %v175_v31 = vpop.f32.mrf.mxu0 }
  0xfe   :  { %v176_v32 = vadd.f32 %v690_v33, %v175_v31 }
 0x100   :  { %v193_v34 = vmax.f32 %v176_v32, 0.0 }
 0x102   :  { %275 = vmatmul.f32.gmra.mxu3 %v193_v34 }
 0x107   :  { %v231_v36 = vpop.f32.mrf.mxu1 }
 0x108   :  { %v232_v37 = vadd.f32 %v468_v35, %v231_v36 }
 0x10a   :  { %v279_v38 = vmax.f32 %v232_v37, 0.0 }
 0x10c   :  { %331 = vmatmul.f32.vlgmr.msra.gmra.mxu2 %v279_v38 }
 0x10f   :  { %v234_v39 = vpop.f32.mrf.mxu1 }
 0x110   :  { %v235_v40 = vadd.f32 %v468_v35, %v234_v39 }
 0x112   :  { %v280_v41 = vmax.f32 %v235_v40, 0.0 }
 0x114   :  { %334 = vmatmul.f32.gmra.mxu2 %v280_v41 }
 0x117   :  { %v237_v42 = vpop.f32.mrf.mxu1 }
 0x118   :  { %v238_v43 = vadd.f32 %v468_v35, %v237_v42 }
 0x11a   :  { %v281_v44 = vmax.f32 %v238_v43, 0.0 }
 0x11c   :  { %337 = vmatmul.f32.gmra.mxu2 %v281_v44 }
 0x11f   :  { %v240_v45 = vpop.f32.mrf.mxu1 }
 0x120   :  { %v241_v33 = vadd.f32 %v468_v35, %v240_v45 }
 0x122   :  { %v282_v46 = vmax.f32 %v241_v33, 0.0 }
 0x124   :  { %340 = vmatmul.f32.gmra.mxu2 %v282_v46 }
 0x127   :  { %v243_v47 = vpop.f32.mrf.mxu1 }
 0x128   :  { %v244_v48 = vadd.f32 %v468_v35, %v243_v47 }
 0x12a   :  { %v283_v49 = vmax.f32 %v244_v48, 0.0 }
 0x12c   :  { %343 = vmatmul.f32.gmra.mxu2 %v283_v49 }
 0x12f   :  { %v246_v50 = vpop.f32.mrf.mxu1 }
 0x130   :  { %v247_v51 = vadd.f32 %v468_v35, %v246_v50 }
 0x132   :  { %v284_v52 = vmax.f32 %v247_v51, 0.0 }
 0x134   :  { %346 = vmatmul.f32.gmra.mxu2 %v284_v52 }
 0x137   :  { %v249_v53 = vpop.f32.mrf.mxu1 }
 0x138   :  { %v250_v54 = vadd.f32 %v468_v35, %v249_v53 }
 0x13a   :  { %v285_v55 = vmax.f32 %v250_v54, 0.0 }
 0x13c   :  { %349 = vmatmul.f32.gmra.mxu2 %v285_v55 }
 0x13f   :  { %v252_v56 = vpop.f32.mrf.mxu1 }
 0x140   :  { %v253_v57 = vadd.f32 %v468_v35, %v252_v56 }
 0x142   :  { %v286_v58 = vmax.f32 %v253_v57, 0.0 }
 0x144   :  { %352 = vmatmul.f32.gmra.mxu2 %v286_v58 }
 0x147   :  { %v255_v59 = vpop.f32.mrf.mxu1 }
 0x148   :  { %v256_v60 = vadd.f32 %v468_v35, %v255_v59 }
 0x14a   :  { %v287_v61 = vmax.f32 %v256_v60, 0.0 }
 0x14c   :  { %355 = vmatmul.f32.gmra.mxu2 %v287_v61 }
 0x14f   :  { %v258_v62 = vpop.f32.mrf.mxu1 }
 0x150   :  { %v259_v63 = vadd.f32 %v468_v35, %v258_v62 }
 0x152   :  { %v288_v0 = vmax.f32 %v259_v63, 0.0 }
 0x154   :  { %358 = vmatmul.f32.gmra.mxu2 %v288_v0 }
 0x157   :  { %v261_v1 = vpop.f32.mrf.mxu1 }
 0x158   :  { %v262_v2 = vadd.f32 %v468_v35, %v261_v1 }
 0x15a   :  { %v289_v3 = vmax.f32 %v262_v2, 0.0 }
 0x15c   :  { %361 = vmatmul.f32.gmra.mxu2 %v289_v3 }
 0x165   :  { %v264_v4 = vpop.f32.mrf.mxu3 }
 0x166   :  { %v265_v5 = vadd.f32 %v468_v35, %v264_v4 }
 0x168   :  { %v290_v6 = vmax.f32 %v265_v5, 0.0 }
 0x16a   :  { %364 = vmatmul.f32.vlgmr.msrb.gmra.mxu3 %v290_v6 }
 0x16d   :  { %v267_v7 = vpop.f32.mrf.mxu3 }
 0x16e   :  { %v268_v8 = vadd.f32 %v468_v35, %v267_v7 }
 0x170   :  { %v291_v9 = vmax.f32 %v268_v8, 0.0 }
 0x172   :  { %367 = vmatmul.f32.gmra.mxu3 %v291_v9 }
 0x175   :  { %v270_v10 = vpop.f32.mrf.mxu3 }
 0x176   :  { %v271_v11 = vadd.f32 %v468_v35, %v270_v10 }
 0x178   :  { %v292_v12 = vmax.f32 %v271_v11, 0.0 }
 0x17a   :  { %370 = vmatmul.f32.gmra.mxu3 %v292_v12 }
 0x17d   :  { %v273_v13 = vpop.f32.mrf.mxu3 }
 0x17e   :  { %v274_v14 = vadd.f32 %v468_v35, %v273_v13 }
 0x180   :  { %v293_v15 = vmax.f32 %v274_v14, 0.0 }
 0x182   :  { %373 = vmatmul.f32.gmra.mxu3 %v293_v15 }
 0x185   :  { %v276_v16 = vpop.f32.mrf.mxu3 }
 0x186   :  { %v277_v17 = vadd.f32 %v468_v35, %v276_v16 }
 0x188   :  { %v294_v18 = vmax.f32 %v277_v17, 0.0 }
 0x18a   :  { %376 = vmatmul.f32.gmra.mxu3 %v294_v18 }
 0x18f   :  { %v332_v20 = vpop.f32.mrf.mxu2 }
 0x190   :  { %v333_v21 = vadd.f32 %v469_v19, %v332_v20 }
 0x192   :  { %380 = vst [vmem:[#allocation5] sm:$0xff] %v333_v21 }
 0x197   :  { %v335_v22 = vpop.f32.mrf.mxu2 }
 0x198   :  { %v336_v23 = vadd.f32 %v469_v19, %v335_v22 }
 0x19a   :  { %381 = vst [vmem:[#allocation5 + $0x8] sm:$0xff] %v336_v23 }
 0x19f   :  { %v338_v24 = vpop.f32.mrf.mxu2 }
 0x1a0   :  { %v339_v25 = vadd.f32 %v469_v19, %v338_v24 }
 0x1a2   :  { %382 = vst [vmem:[#allocation5 + $0x10] sm:$0xff] %v339_v25 }
 0x1a7   :  { %v341_v26 = vpop.f32.mrf.mxu2 }
 0x1a8   :  { %v342_v27 = vadd.f32 %v469_v19, %v341_v26 }
 0x1aa   :  { %383 = vst [vmem:[#allocation5 + $0x18] sm:$0xff] %v342_v27 }
 0x1af   :  { %v344_v28 = vpop.f32.mrf.mxu2 }
 0x1b0   :  { %v345_v29 = vadd.f32 %v469_v19, %v344_v28 }
 0x1b2   :  { %384 = vst [vmem:[#allocation5 + $0x20] sm:$0xff] %v345_v29 }
 0x1b7   :  { %v347_v30 = vpop.f32.mrf.mxu2 }
 0x1b8   :  { %v348_v31 = vadd.f32 %v469_v19, %v347_v30 }
 0x1ba   :  { %385 = vst [vmem:[#allocation5 + $0x28] sm:$0xff] %v348_v31 }
 0x1bf   :  { %v350_v32 = vpop.f32.mrf.mxu2 }
 0x1c0   :  { %v351_v34 = vadd.f32 %v469_v19, %v350_v32 }
 0x1c2   :  { %386 = vst [vmem:[#allocation5 + $0x30] sm:$0xff] %v351_v34 }
 0x1c7   :  { %v353_v35 = vpop.f32.mrf.mxu2 }
 0x1c8   :  { %v354_v36 = vadd.f32 %v469_v19, %v353_v35 }
 0x1ca   :  { %387 = vst [vmem:[#allocation5 + $0x38] sm:$0xff] %v354_v36 }
 0x1cf   :  { %v356_v37 = vpop.f32.mrf.mxu2 }
 0x1d0   :  { %v357_v38 = vadd.f32 %v469_v19, %v356_v37 }
 0x1d2   :  { %388 = vst [vmem:[#allocation5 + $0x40] sm:$0xff] %v357_v38 }
 0x1d7   :  { %v359_v39 = vpop.f32.mrf.mxu2 }
 0x1d8   :  { %v360_v40 = vadd.f32 %v469_v19, %v359_v39 }
 0x1da   :  { %389 = vst [vmem:[#allocation5 + $0x48] sm:$0xff] %v360_v40 }
 0x1df   :  { %v362_v41 = vpop.f32.mrf.mxu2 }
 0x1e0   :  { %v363_v42 = vadd.f32 %v469_v19, %v362_v41 }
 0x1e2   :  { %390 = vst [vmem:[#allocation5 + $0x50] sm:$0xff] %v363_v42 }
 0x1ed   :  { %v365_v43 = vpop.f32.mrf.mxu3 }
 0x1ee   :  { %v366_v44 = vadd.f32 %v469_v19, %v365_v43 }
 0x1f0   :  { %391 = vst [vmem:[#allocation5 + $0x58] sm:$0xff] %v366_v44 }
 0x1f5   :  { %v368_v45 = vpop.f32.mrf.mxu3 }
 0x1f6   :  { %v369_v33 = vadd.f32 %v469_v19, %v368_v45 }
 0x1f8   :  { %392 = vst [vmem:[#allocation5 + $0x60] sm:$0xff] %v369_v33 }
 0x1fd   :  { %v371_v46 = vpop.f32.mrf.mxu3 }
 0x1fe   :  { %v372_v47 = vadd.f32 %v469_v19, %v371_v46 }
 0x200   :  { %393 = vst [vmem:[#allocation5 + $0x68] sm:$0xff] %v372_v47 }
 0x205   :  { %v374_v48 = vpop.f32.mrf.mxu3 }
 0x206   :  { %v375_v49 = vadd.f32 %v469_v19, %v374_v48 }
 0x208   :  { %394 = vst [vmem:[#allocation5 + $0x70] sm:$0xff] %v375_v49 }
 0x20d   :  { %v377_v50 = vpop.f32.mrf.mxu3 }
 0x20e   :  { %v378_v51 = vadd.f32 %v469_v19, %v377_v50 }
 0x210   :  { %395 = vst [vmem:[#allocation5 + $0x78] sm:$0xff] %v378_v51 }
 0x211   :  { %408 = dma.vmem_to_hbm [thread:$0]  %s401_s28, 2048, %s403_s10, [#allocation4], %s523_s29, %s523_s29, %s524_s30  }
 0x212   :  { %520 = dma.done.wait [#allocation4], 2048  }
 0x213   :  { %521 = vsyncadd [#allocation4], 4294965248 }
 0x214   :  { %413 = vsyncpa [#allocation3], 1 }
 0x215   :  { %414 = vsyncpa [#allocation4], 1 }

</bundles_post_ra>
